<compile_context>
chip_gen: v7x
topology: tpu7x:2x2x1
jax: 0.10.0
libtpu: 0.0.40
codegen_flags: <defaults>
</compile_context>

<pallas_src>
import functools

import jax
import jax.numpy as jnp
from jax import lax
from jax.experimental import pallas as pl
from jax.experimental.pallas import tpu as pltpu

ALPHA = 0.25
GAMMA = 2.0          # baked into the kernel as an explicit square (w * w)
EPSILON = 1e-6

LANES = 128
MAX_TM = 8192        # sublane rows per streamed block: 8192*128*4B = 4 MiB
CHUNK_ROWS = 256     # in-kernel chunk: bounds live temporaries to ~1.5 MiB
VMEM_LIMIT_BYTES = 32 * 1024 * 1024


def _cdiv(a, b):
    return (a + b - 1) // b


def _sublane(dtype):
    """Sublane tile rows for a dtype (8 for 4B, 16 for 2B, 32 for 1B)."""
    return {4: 8, 2: 16, 1: 32}.get(jnp.dtype(dtype).itemsize, 8)


def _chunk_rows_for(tm, sub):
    """Largest multiple of `sub` that divides tm and is <= CHUNK_ROWS."""
    cap = min(CHUNK_ROWS, tm)
    for cand in range(cap, sub - 1, -sub):
        if tm % cand == 0:
            return cand
    return sub


def _multiloss_sums_kernel(x_ref, t_ref, out_ref, *, tm, chunk_rows,
                           blocks_per_core, n_blocks_total, has_phantom):
    """Accumulate 5 global sums into a resident (1, 5, 8, 128) output block.

    Channel q along axis 1 of the output block:
      0: sum of per-element BCE-with-logits
      1: sum of focal_weight * BCE
      2: sum of sigmoid(x) * t     (dice intersection)
      3: sum of sigmoid(x)
      4: sum of t
    """
    c = pl.program_id(0)   # parallel (megacore) axis
    k = pl.program_id(1)   # reduction axis (output block stays resident)

    @pl.when(k == 0)
    def _():
        out_ref[...] = jnp.zeros_like(out_ref)

    def accumulate_chunk(x_raw, t_raw):
        x = x_raw.astype(jnp.float32)
        t = t_raw.astype(jnp.float32)
        # Two transcendentals per element (exp, log1p); sigmoid derived from
        # the same exp(-|x|).
        e = jnp.exp(-jnp.abs(x))
        p = jnp.where(x >= 0.0, 1.0, e) / (1.0 + e)            # sigmoid(x)
        bce = jnp.maximum(x, 0.0) - x * t + jnp.log1p(e)       # stable BCE
        pt_prod = p * t                                        # dice numerator
        w = (t + p) - 2.0 * pt_prod                            # == 1 - pt
        focal_w = ALPHA * (w * w)                              # gamma == 2.0
        parts = (bce, focal_w * bce, pt_prod, p, t)
        rows = x.shape[0]
        # (rows,128) -> (rows//8, 8, 128); sum over leading dim is pure vreg
        # adds (no cross-lane XLU work until the wrapper's final reduction).
        for q, v in enumerate(parts):
            out_ref[0, q, :, :] += jnp.sum(
                v.reshape(rows // 8, 8, LANES), axis=0)

    def compute():
        n_chunks = tm // chunk_rows   # static
        if n_chunks == 1:
            accumulate_chunk(x_ref[...], t_ref[...])
        else:
            def body(j, carry):
                r0 = pl.multiple_of(j * chunk_rows, chunk_rows)
                accumulate_chunk(x_ref[pl.ds(r0, chunk_rows), :],
                                 t_ref[pl.ds(r0, chunk_rows), :])
                return carry
            lax.fori_loop(0, n_chunks, body, 0)

    if has_phantom:
        # Odd total block count on the 2-core split: the clamped index_map
        # re-reads the last valid block; skip its (duplicate) accumulation.
        blk = c * blocks_per_core + k
        pl.when(blk < n_blocks_total)(compute)
    else:
        compute()


def _partial_sums(x, t):
    """Plain-JAX 5-sums for the small tail (and the tiny-input fallback)."""
    x = x.astype(jnp.float32)
    t = t.astype(jnp.float32)
    e = jnp.exp(-jnp.abs(x))
    p = jnp.where(x >= 0.0, 1.0, e) / (1.0 + e)
    bce = jnp.maximum(x, 0.0) - x * t + jnp.log1p(e)
    pt_prod = p * t
    w = (t + p) - 2.0 * pt_prod
    focal_w = ALPHA * (w * w)
    return jnp.stack([jnp.sum(bce), jnp.sum(focal_w * bce),
                      jnp.sum(pt_prod), jnp.sum(p), jnp.sum(t)])


@jax.jit
def multi_loss(logits, targets):
    """Total loss = BCEWithLogitsLoss(mean) + FocalLoss(mean) + DiceLoss."""
    n = logits.size                      # static at trace time
    x = logits.reshape(-1)
    t = targets.reshape(-1)

    sub = max(_sublane(logits.dtype), _sublane(targets.dtype))
    rows_full = n // LANES
    rows_aligned = (rows_full // sub) * sub

    if rows_aligned == 0:
        # Input smaller than one (sub, 128) tile: plain-JAX fallback.
        totals = _partial_sums(x, t)
    else:
        if rows_aligned <= MAX_TM:
            n_blocks_total = 1
            tm = rows_aligned                               # multiple of sub
        else:
            # Balanced block size (multiple of CHUNK_ROWS) so the leftover
            # sent to the plain-JAX tail stays a small fraction of the input.
            n_blocks_total = _cdiv(rows_aligned, MAX_TM)
            tm = (rows_aligned // n_blocks_total // CHUNK_ROWS) * CHUNK_ROWS
            tm = max(tm, CHUNK_ROWS)
        chunk_rows = _chunk_rows_for(tm, sub)

        bulk_rows = n_blocks_total * tm
        bulk_elems = bulk_rows * LANES

        # Megacore split: real win on v7x (2 TCs), harmless serial loop on
        # v5e/v6e.  Always 2 cores when there are >= 2 blocks; an odd block
        # count produces one phantom step (clamped index_map, pl.when skip).
        n_cores = 2 if n_blocks_total >= 2 else 1
        blocks_per_core = _cdiv(n_blocks_total, n_cores)
        has_phantom = (n_cores * blocks_per_core) != n_blocks_total

        # Lane-dense 2-D views of the aligned bulk; when the whole input is
        # aligned this is a free reshape (no copy, no pad).
        xb = (x if bulk_elems == n else x[:bulk_elems]).reshape(bulk_rows, LANES)
        tb = (t if bulk_elems == n else t[:bulk_elems]).reshape(bulk_rows, LANES)

        kernel = functools.partial(
            _multiloss_sums_kernel,
            tm=tm, chunk_rows=chunk_rows,
            blocks_per_core=blocks_per_core,
            n_blocks_total=n_blocks_total,
            has_phantom=has_phantom,
        )

        if has_phantom:
            in_map = lambda c, k: (
                jnp.minimum(c * blocks_per_core + k, n_blocks_total - 1), 0)
        else:
            in_map = lambda c, k: (c * blocks_per_core + k, 0)

        sums = pl.pallas_call(
            kernel,
            out_shape=jax.ShapeDtypeStruct((n_cores, 5, 8, LANES), jnp.float32),
            grid_spec=pltpu.PrefetchScalarGridSpec(
                num_scalar_prefetch=0,
                grid=(n_cores, blocks_per_core),
                in_specs=[
                    pl.BlockSpec((tm, LANES), in_map),
                    pl.BlockSpec((tm, LANES), in_map),
                ],
                out_specs=pl.BlockSpec((1, 5, 8, LANES),
                                       lambda c, k: (c, 0, 0, 0)),
            ),
            compiler_params=pltpu.CompilerParams(
                dimension_semantics=("parallel", "arbitrary"),
                vmem_limit_bytes=VMEM_LIMIT_BYTES),
        )(xb, tb)

        totals = jnp.sum(sums, axis=(0, 2, 3))   # (5,) global sums (bulk)
        if bulk_elems < n:
            # Tail (< one block, typically < sub*128 elements): exact, fused,
            # no padding of the main streams needed.
            totals = totals + _partial_sums(x[bulk_elems:], t[bulk_elems:])

    sum_bce, sum_focal, inter, sum_p, sum_t = (
        totals[0], totals[1], totals[2], totals[3], totals[4])

    nf = jnp.float32(n)
    bce = sum_bce / nf                                   # BCEWithLogits (mean)
    focal = sum_focal / nf                               # focal loss (mean)
    dice_coef = (2.0 * inter + EPSILON) / (sum_p + sum_t + EPSILON)
    dice = 1.0 - dice_coef                               # dice loss
    return bce + focal + dice


def _multi_loss_ref(logits, targets):
    """Pure-JAX reference mirroring the PyTorch module."""
    x = logits.astype(jnp.float32)
    t = targets.astype(jnp.float32)
    p = jax.nn.sigmoid(x)
    bce_el = jnp.maximum(x, 0.0) - x * t + jnp.log1p(jnp.exp(-jnp.abs(x)))
    bce = jnp.mean(bce_el)
    pt = t * p + (1.0 - t) * (1.0 - p)
    focal = jnp.mean(ALPHA * (1.0 - pt) ** GAMMA * bce_el)
    inter = jnp.sum(p * t)
    dice = 1.0 - (2.0 * inter + EPSILON) / (jnp.sum(p) + jnp.sum(t) + EPSILON)
    return bce + focal + dice


if __name__ == "__main__":
    key = jax.random.PRNGKey(0)
    k1, k2 = jax.random.split(key)

    # 1) Small aligned shape (2048 elems = 16 x 128): single block, no tail,
    #    zero-copy reshape into the kernel.
    B, C, H, W = 2, 4, 16, 16
    logits = jax.random.normal(k1, (B, C, H, W), dtype=jnp.float32)
    targets = jax.random.bernoulli(k2, 0.5, (B, C, H, W)).astype(jnp.float32)
    out = jax.block_until_ready(multi_loss(logits, targets))
    ref = _multi_loss_ref(logits, targets)
    assert jnp.allclose(out, ref, rtol=1e-5, atol=1e-5), (out, ref)

    # 2) Unaligned shape (4845 elems): kernel handles the aligned bulk, the
    #    <1K-element tail is folded in via plain JAX (no pad, no mask).
    k3, k4 = jax.random.split(k1)
    logits2 = jax.random.normal(k3, (3, 5, 17, 19), dtype=jnp.float32)
    targets2 = jax.random.bernoulli(k4, 0.3, (3, 5, 17, 19)).astype(jnp.float32)
    out2 = jax.block_until_ready(multi_loss(logits2, targets2))
    ref2 = _multi_loss_ref(logits2, targets2)
    assert jnp.allclose(out2, ref2, rtol=1e-5, atol=1e-5), (out2, ref2)

    # 3) Moderate shape exercising the multi-block, 2-core grid and the
    #    chunked inner loop (balanced tm, small tail).
    k5, k6 = jax.random.split(k2)
    logits3 = jax.random.normal(k5, (2, 3, 512, 430), dtype=jnp.float32)
    targets3 = jax.random.bernoulli(k6, 0.4, (2, 3, 512, 430)).astype(jnp.float32)
    out3 = jax.block_until_ready(multi_loss(logits3, targets3))
    ref3 = _multi_loss_ref(logits3, targets3)
    assert jnp.allclose(out3, ref3, rtol=1e-4, atol=1e-4), (out3, ref3)

    print("KERNEL_OK")
</pallas_src>

<mosaic_0001>
module attributes {stable_mosaic.version = 11 : i64} {
  func.func @_multiloss_sums_kernel(%arg0: i32, %arg1: i32, %arg2: memref<16x128xf32, #tpu.memory_space<vmem>>, %arg3: memref<16x128xf32, #tpu.memory_space<vmem>>, %arg4: memref<1x5x8x128xf32, #tpu.memory_space<vmem>>) attributes {dimension_semantics = [#tpu.dimension_semantics<parallel>, #tpu.dimension_semantics<arbitrary>], iteration_bounds = array<i64: 1, 1>, scalar_prefetch = 0 : i64, scratch_operands = 0 : i64, tpu.core_type = #tpu.core_type<tc>, window_params = [{transform_indices = @transform_0, window_bounds = array<i64: 16, 128>}, {transform_indices = @transform_1, window_bounds = array<i64: 16, 128>}, {transform_indices = @transform_2, window_bounds = array<i64: 1, 5, 8, 128>}]} {
    %c0_i32 = arith.constant 0 : i32
    %0 = arith.cmpi eq, %arg1, %c0_i32 : i32
    %1 = arith.extui %0 : i1 to i32
    %c0_i32_0 = arith.constant 0 : i32
    %2 = arith.cmpi ne, %1, %c0_i32_0 : i32
    scf.if %2 {
      %cst_51 = arith.constant 0.000000e+00 : f32
      %71 = vector.broadcast %cst_51 : f32 to vector<1x5x8x128xf32>
      %c0_52 = arith.constant 0 : index
      %c0_53 = arith.constant 0 : index
      %c0_54 = arith.constant 0 : index
      %c0_55 = arith.constant 0 : index
      %72 = vector.load %arg4[%c0_52, %c0_53, %c0_54, %c0_55] : memref<1x5x8x128xf32, #tpu.memory_space<vmem>>, vector<1x5x8x128xf32>
      tpu.vector_store %arg4[%c0_52, %c0_53, %c0_54, %c0_55], %71 {strides = array<i32>} : memref<1x5x8x128xf32, #tpu.memory_space<vmem>>, vector<1x5x8x128xf32>,
    } else {
    }
    %c0 = arith.constant 0 : index
    %c0_1 = arith.constant 0 : index
    %3 = vector.load %arg2[%c0, %c0_1] : memref<16x128xf32, #tpu.memory_space<vmem>>, vector<16x128xf32>
    %c0_2 = arith.constant 0 : index
    %c0_3 = arith.constant 0 : index
    %4 = vector.load %arg3[%c0_2, %c0_3] : memref<16x128xf32, #tpu.memory_space<vmem>>, vector<16x128xf32>
    %5 = math.absf %3 : vector<16x128xf32>
    %cst = arith.constant 0.000000e+00 : f32
    %6 = vector.broadcast %cst : f32 to vector<16x128xf32>
    %7 = arith.subf %6, %5 : vector<16x128xf32>
    %8 = math.exp %7 : vector<16x128xf32>
    %cst_4 = arith.constant 0.000000e+00 : f32
    %9 = vector.broadcast %cst_4 : f32 to vector<16x128xf32>
    %10 = arith.cmpf oge, %3, %9 : vector<16x128xf32>
    %cst_5 = arith.constant 1.000000e+00 : f32
    %11 = vector.broadcast %cst_5 : f32 to vector<16x128xf32>
    %12 = arith.select %10, %11, %8 : vector<16x128xi1>, vector<16x128xf32>
    %cst_6 = arith.constant 1.000000e+00 : f32
    %13 = vector.broadcast %cst_6 : f32 to vector<16x128xf32>
    %14 = arith.addf %13, %8 : vector<16x128xf32>
    %15 = arith.divf %12, %14 : vector<16x128xf32>
    %cst_7 = arith.constant 0.000000e+00 : f32
    %16 = vector.broadcast %cst_7 : f32 to vector<16x128xf32>
    %17 = arith.maximumf %3, %16 : vector<16x128xf32>
    %18 = arith.mulf %3, %4 : vector<16x128xf32>
    %19 = arith.subf %17, %18 : vector<16x128xf32>
    %20 = math.log1p %8 : vector<16x128xf32>
    %21 = arith.addf %19, %20 : vector<16x128xf32>
    %22 = arith.mulf %15, %4 : vector<16x128xf32>
    %23 = arith.addf %4, %15 : vector<16x128xf32>
    %cst_8 = arith.constant 2.000000e+00 : f32
    %24 = vector.broadcast %cst_8 : f32 to vector<16x128xf32>
    %25 = arith.mulf %24, %22 : vector<16x128xf32>
    %26 = arith.subf %23, %25 : vector<16x128xf32>
    %27 = arith.mulf %26, %26 : vector<16x128xf32>
    %cst_9 = arith.constant 2.500000e-01 : f32
    %28 = vector.broadcast %cst_9 : f32 to vector<16x128xf32>
    %29 = arith.mulf %28, %27 : vector<16x128xf32>
    %30 = arith.mulf %29, %21 : vector<16x128xf32>
    %c0_10 = arith.constant 0 : index
    %c0_11 = arith.constant 0 : index
    %c0_12 = arith.constant 0 : index
    %c0_13 = arith.constant 0 : index
    %31 = vector.load %arg4[%c0_10, %c0_11, %c0_12, %c0_13] : memref<1x5x8x128xf32, #tpu.memory_space<vmem>>, vector<1x1x8x128xf32>
    %32 = vector.shape_cast %31 : vector<1x1x8x128xf32> to vector<8x128xf32>
    %33 = vector.shape_cast %21 : vector<16x128xf32> to vector<2x8x128xf32>
    %cst_14 = arith.constant dense<0.000000e+00> : vector<8x128xf32>
    %34 = vector.multi_reduction <add>, %33, %cst_14 [0] : vector<2x8x128xf32> to vector<8x128xf32>
    %35 = arith.addf %32, %34 : vector<8x128xf32>
    %c0_15 = arith.constant 0 : index
    %c0_16 = arith.constant 0 : index
    %c0_17 = arith.constant 0 : index
    %c0_18 = arith.constant 0 : index
    %36 = vector.load %arg4[%c0_15, %c0_16, %c0_17, %c0_18] : memref<1x5x8x128xf32, #tpu.memory_space<vmem>>, vector<1x1x8x128xf32>
    %37 = vector.shape_cast %36 : vector<1x1x8x128xf32> to vector<8x128xf32>
    %38 = vector.shape_cast %35 : vector<8x128xf32> to vector<1x1x8x128xf32>
    tpu.vector_store %arg4[%c0_15, %c0_16, %c0_17, %c0_18], %38 {strides = array<i32>} : memref<1x5x8x128xf32, #tpu.memory_space<vmem>>, vector<1x1x8x128xf32>,
    %c0_19 = arith.constant 0 : index
    %c1 = arith.constant 1 : index
    %c0_20 = arith.constant 0 : index
    %c0_21 = arith.constant 0 : index
    %39 = vector.load %arg4[%c0_19, %c1, %c0_20, %c0_21] : memref<1x5x8x128xf32, #tpu.memory_space<vmem>>, vector<1x1x8x128xf32>
    %40 = vector.shape_cast %39 : vector<1x1x8x128xf32> to vector<8x128xf32>
    %41 = vector.shape_cast %30 : vector<16x128xf32> to vector<2x8x128xf32>
    %cst_22 = arith.constant dense<0.000000e+00> : vector<8x128xf32>
    %42 = vector.multi_reduction <add>, %41, %cst_22 [0] : vector<2x8x128xf32> to vector<8x128xf32>
    %43 = arith.addf %40, %42 : vector<8x128xf32>
    %c0_23 = arith.constant 0 : index
    %c1_24 = arith.constant 1 : index
    %c0_25 = arith.constant 0 : index
    %c0_26 = arith.constant 0 : index
    %44 = vector.load %arg4[%c0_23, %c1_24, %c0_25, %c0_26] : memref<1x5x8x128xf32, #tpu.memory_space<vmem>>, vector<1x1x8x128xf32>
    %45 = vector.shape_cast %44 : vector<1x1x8x128xf32> to vector<8x128xf32>
    %46 = vector.shape_cast %43 : vector<8x128xf32> to vector<1x1x8x128xf32>
    tpu.vector_store %arg4[%c0_23, %c1_24, %c0_25, %c0_26], %46 {strides = array<i32>} : memref<1x5x8x128xf32, #tpu.memory_space<vmem>>, vector<1x1x8x128xf32>,
    %c0_27 = arith.constant 0 : index
    %c2 = arith.constant 2 : index
    %c0_28 = arith.constant 0 : index
    %c0_29 = arith.constant 0 : index
    %47 = vector.load %arg4[%c0_27, %c2, %c0_28, %c0_29] : memref<1x5x8x128xf32, #tpu.memory_space<vmem>>, vector<1x1x8x128xf32>
    %48 = vector.shape_cast %47 : vector<1x1x8x128xf32> to vector<8x128xf32>
    %49 = vector.shape_cast %22 : vector<16x128xf32> to vector<2x8x128xf32>
    %cst_30 = arith.constant dense<0.000000e+00> : vector<8x128xf32>
    %50 = vector.multi_reduction <add>, %49, %cst_30 [0] : vector<2x8x128xf32> to vector<8x128xf32>
    %51 = arith.addf %48, %50 : vector<8x128xf32>
    %c0_31 = arith.constant 0 : index
    %c2_32 = arith.constant 2 : index
    %c0_33 = arith.constant 0 : index
    %c0_34 = arith.constant 0 : index
    %52 = vector.load %arg4[%c0_31, %c2_32, %c0_33, %c0_34] : memref<1x5x8x128xf32, #tpu.memory_space<vmem>>, vector<1x1x8x128xf32>
    %53 = vector.shape_cast %52 : vector<1x1x8x128xf32> to vector<8x128xf32>
    %54 = vector.shape_cast %51 : vector<8x128xf32> to vector<1x1x8x128xf32>
    tpu.vector_store %arg4[%c0_31, %c2_32, %c0_33, %c0_34], %54 {strides = array<i32>} : memref<1x5x8x128xf32, #tpu.memory_space<vmem>>, vector<1x1x8x128xf32>,
    %c0_35 = arith.constant 0 : index
    %c3 = arith.constant 3 : index
    %c0_36 = arith.constant 0 : index
    %c0_37 = arith.constant 0 : index
    %55 = vector.load %arg4[%c0_35, %c3, %c0_36, %c0_37] : memref<1x5x8x128xf32, #tpu.memory_space<vmem>>, vector<1x1x8x128xf32>
    %56 = vector.shape_cast %55 : vector<1x1x8x128xf32> to vector<8x128xf32>
    %57 = vector.shape_cast %15 : vector<16x128xf32> to vector<2x8x128xf32>
    %cst_38 = arith.constant dense<0.000000e+00> : vector<8x128xf32>
    %58 = vector.multi_reduction <add>, %57, %cst_38 [0] : vector<2x8x128xf32> to vector<8x128xf32>
    %59 = arith.addf %56, %58 : vector<8x128xf32>
    %c0_39 = arith.constant 0 : index
    %c3_40 = arith.constant 3 : index
    %c0_41 = arith.constant 0 : index
    %c0_42 = arith.constant 0 : index
    %60 = vector.load %arg4[%c0_39, %c3_40, %c0_41, %c0_42] : memref<1x5x8x128xf32, #tpu.memory_space<vmem>>, vector<1x1x8x128xf32>
    %61 = vector.shape_cast %60 : vector<1x1x8x128xf32> to vector<8x128xf32>
    %62 = vector.shape_cast %59 : vector<8x128xf32> to vector<1x1x8x128xf32>
    tpu.vector_store %arg4[%c0_39, %c3_40, %c0_41, %c0_42], %62 {strides = array<i32>} : memref<1x5x8x128xf32, #tpu.memory_space<vmem>>, vector<1x1x8x128xf32>,
    %c0_43 = arith.constant 0 : index
    %c4 = arith.constant 4 : index
    %c0_44 = arith.constant 0 : index
    %c0_45 = arith.constant 0 : index
    %63 = vector.load %arg4[%c0_43, %c4, %c0_44, %c0_45] : memref<1x5x8x128xf32, #tpu.memory_space<vmem>>, vector<1x1x8x128xf32>
    %64 = vector.shape_cast %63 : vector<1x1x8x128xf32> to vector<8x128xf32>
    %65 = vector.shape_cast %4 : vector<16x128xf32> to vector<2x8x128xf32>
    %cst_46 = arith.constant dense<0.000000e+00> : vector<8x128xf32>
    %66 = vector.multi_reduction <add>, %65, %cst_46 [0] : vector<2x8x128xf32> to vector<8x128xf32>
    %67 = arith.addf %64, %66 : vector<8x128xf32>
    %c0_47 = arith.constant 0 : index
    %c4_48 = arith.constant 4 : index
    %c0_49 = arith.constant 0 : index
    %c0_50 = arith.constant 0 : index
    %68 = vector.load %arg4[%c0_47, %c4_48, %c0_49, %c0_50] : memref<1x5x8x128xf32, #tpu.memory_space<vmem>>, vector<1x1x8x128xf32>
    %69 = vector.shape_cast %68 : vector<1x1x8x128xf32> to vector<8x128xf32>
    %70 = vector.shape_cast %67 : vector<8x128xf32> to vector<1x1x8x128xf32>
    tpu.vector_store %arg4[%c0_47, %c4_48, %c0_49, %c0_50], %70 {strides = array<i32>} : memref<1x5x8x128xf32, #tpu.memory_space<vmem>>, vector<1x1x8x128xf32>,
    return
  }
  func.func @transform_0(%arg0: i32, %arg1: i32) -> (i32, i32) {
    %c1_i32 = arith.constant 1 : i32
    %0 = arith.muli %arg0, %c1_i32 : i32
    %1 = arith.addi %0, %arg1 : i32
    %c0_i32 = arith.constant 0 : i32
    %c0_i32_0 = arith.constant 0 : i32
    return %1, %c0_i32 : i32, i32
  }
  func.func @transform_1(%arg0: i32, %arg1: i32) -> (i32, i32) {
    %c1_i32 = arith.constant 1 : i32
    %0 = arith.muli %arg0, %c1_i32 : i32
    %1 = arith.addi %0, %arg1 : i32
    %c0_i32 = arith.constant 0 : i32
    %c0_i32_0 = arith.constant 0 : i32
    return %1, %c0_i32 : i32, i32
  }
  func.func @transform_2(%arg0: i32, %arg1: i32) -> (i32, i32, i32, i32) {
    %c0_i32 = arith.constant 0 : i32
    %c0_i32_0 = arith.constant 0 : i32
    %c0_i32_1 = arith.constant 0 : i32
    %c0_i32_2 = arith.constant 0 : i32
    return %arg0, %c0_i32, %c0_i32_0, %c0_i32_1 : i32, i32, i32, i32
  }
}

</mosaic_0001>

<bundles_post_ra>
// kernel: multi_loss.1
= control target key start
LH: loop header
LB: loop body
LE: loop exit
PB: predicated region body
PF: predicated region fallthrough
CT: control target
= control target key end

     0   :  { %s235_s0 = inlined_call_operand.vmem [shape: f32[16,128], index: 0, kind: input, shape index: {}]   ;;  %s236_s1 = inlined_call_operand.vmem [shape: f32[16,128], index: 1, kind: input, shape index: {}]   ;;  %s237_s2 = inlined_call_operand.vmem [shape: f32[1,5,8,128], index: 2, kind: output, shape index: {}]  }
   0x1   :  { %v64_v0 = vld [vmem:[%s235_s0] sm:$0xff]  ;;  %v65_v1 = vld [vmem:[%s235_s0 + $0x8] sm:$0xff] }
   0x2   :  { %v68_v2 = vand.u32 2147483647, %v64_v0  ;;  %v69_v3 = vand.u32 2147483647, %v65_v1  ;;  %v66_v4 = vld [vmem:[%s236_s1] sm:$0xff]  ;;  %v67_v5 = vld [vmem:[%s236_s1 + $0x8] sm:$0xff] }
   0x3   :  { %v147_v8 = vadd.f32 %v67_v5, %v66_v4  ;;  %vm76_vm0 = vcmp.ge.f32.partialorder %v64_v0, 0.0  ;;  %vm77_vm1 = vcmp.ge.f32.partialorder %v65_v1, 0.0  ;;  %v86_v17 = vmax.f32 %v64_v0, 0.0 }
   0x4   :  { %v70_v6 = vsub.f32 0.0, %v68_v2  ;;  %v71_v7 = vsub.f32 0.0, %v69_v3  ;;  %v87_v18 = vmax.f32 %v65_v1, 0.0  ;;  %v88_v19 = vmul.f32 %v66_v4, %v64_v0 }
   0x5   :  { %173 = vst [vmem:[%s237_s2 + $0x20] sm:$0xff] %v147_v8  ;;  %v89_v21 = vmul.f32 %v67_v5, %v65_v1 }
   0x6   :  { %v72_v9 = vmul.f32 1.442695, %v70_v6  ;;  %v74_v10 = vmul.f32 1.442695, %v71_v7  ;;  %v90_v29 = vsub.f32 %v86_v17, %v88_v19 }
   0x7   :  { %v91_v33 = vsub.f32 %v87_v18, %v89_v21 }
   0x8   :  { %175 = vpow2.f32 %v72_v9 }
   0x9   :  { %177 = vpow2.f32 %v74_v10 }
  0x12   :  { %v176_v11 = vpop.eup %175 }
  0x13   :  { %v178_v12 = vpop.eup %177  ;;  %v80_v13 = vadd.f32 1.0, %v176_v11  ;;  %v95_v15 = vmul.f32 -0.5, %v176_v11  ;;  %v98_v22 = vand.u32 2147483647, %v176_v11  ;;  %v78_v24 = vsel %vm76_vm0, 1.0, %v176_v11 }
  0x14   :  { %v81_v14 = vadd.f32 1.0, %v178_v12  ;;  %v104_v16 = vmul.f32 -0.5, %v178_v12  ;;  %v107_v25 = vand.u32 2147483647, %v178_v12  ;;  %v79_v26 = vsel %vm77_vm1, 1.0, %v178_v12 }
  0x15   :  { %179 = vrcp.f32 %v80_v13  ;;  %v96_v20 = vadd.f32 1.0, %v95_v15  ;;  %vm217_vm2 = vcmp.lt.f32.partialorder %v98_v22, 0.0004427343 }
  0x16   :  { %181 = vrcp.f32 %v81_v14  ;;  %v105_v23 = vadd.f32 1.0, %v104_v16  ;;  %vm108_vm3 = vcmp.lt.f32.partialorder %v107_v25, 0.0004427343 }
  0x17   :  { %183 = vlog2.f32 %v80_v13  ;;  %v97_v30 = vmul.f32 %v176_v11, %v96_v20 }
  0x18   :  { %185 = vlog2.f32 %v81_v14  ;;  %v106_v35 = vmul.f32 %v178_v12, %v105_v23 }
  0x1f   :  { %v180_v27 = vpop.eup %179 }
  0x20   :  { %v182_v28 = vpop.eup %181  ;;  %v83_v31 = vmul.f32 %v180_v27, %v78_v24 }
  0x21   :  { %v184_v32 = vpop.eup %183  ;;  %v85_v36 = vmul.f32 %v182_v28, %v79_v26 }
  0x22   :  { %v186_v37 = vpop.eup %185  ;;  %v94_v38 = vmul.f32 0.6931472, %v184_v32  ;;  %v112_v39 = vmul.f32 %v83_v31, %v66_v4  ;;  %v114_v40 = vadd.f32 %v83_v31, %v66_v4 }
  0x23   :  { %v103_v41 = vmul.f32 0.6931472, %v186_v37  ;;  %v113_v42 = vmul.f32 %v85_v36, %v67_v5  ;;  %v115_v43 = vadd.f32 %v85_v36, %v67_v5  ;;  %v142_v44 = vadd.f32 %v85_v36, %v83_v31 }
  0x24   :  { %v100_v45 = vsel %vm217_vm2, %v97_v30, %v94_v38  ;;  %v116_v46 = vmul.f32 2.0, %v112_v39 }
  0x25   :  { %v109_v47 = vsel %vm108_vm3, %v106_v35, %v103_v41  ;;  %v117_v48 = vmul.f32 2.0, %v113_v42  ;;  %v137_v49 = vadd.f32 %v113_v42, %v112_v39  ;;  %v110_v50 = vadd.f32 %v100_v45, %v90_v29  ;;  %171 = vst [vmem:[%s237_s2 + $0x18] sm:$0xff] %v142_v44 }
  0x26   :  { %v111_v51 = vadd.f32 %v109_v47, %v91_v33  ;;  %v118_v52 = vsub.f32 %v114_v40, %v116_v46 }
  0x27   :  { %v119_v53 = vsub.f32 %v115_v43, %v117_v48  ;;  %169 = vst [vmem:[%s237_s2 + $0x10] sm:$0xff] %v137_v49 }
  0x28   :  { %v127_v54 = vadd.f32 %v111_v51, %v110_v50  ;;  %v120_v55 = vmul.f32 %v118_v52, %v118_v52 }
  0x29   :  { %v121_v56 = vmul.f32 %v119_v53, %v119_v53 }
  0x2a   :  { %v122_v57 = vmul.f32 0.25, %v120_v55  ;;  %129 = vst [vmem:[%s237_s2] sm:$0xff] %v127_v54 }
  0x2b   :  { %v123_v58 = vmul.f32 0.25, %v121_v56 }
  0x2c   :  { %v124_v59 = vmul.f32 %v122_v57, %v110_v50 }
  0x2d   :  { %v125_v60 = vmul.f32 %v123_v58, %v111_v51 }
  0x2f   :  { %v132_v61 = vadd.f32 %v125_v60, %v124_v59 }
  0x31   :  { %167 = vst [vmem:[%s237_s2 + $0x8] sm:$0xff] %v132_v61 }

</bundles_post_ra>
